<compile_context>
chip_gen: v7x
topology: tpu7x:2x2x1
jax: 0.10.0
libtpu: 0.0.40
codegen_flags: <defaults>
</compile_context>

<pallas_src>
import functools

import jax
import jax.numpy as jnp
from jax.experimental import pallas as pl
from jax.experimental.pallas import tpu as pltpu


def _bend_penalty_kernel(x_ref, o_ref, *, w, n_rows, block_t):
    # x_ref: (T, H, Wp) block; Wp = k*w original slices packed along the lane dim.
    # o_ref: (1, 8, 128) f32 per-block partials; lanes 0/1/2 of row 0 carry
    #        sum(Tyy^2), sum(Txx^2), sum(Txy^2) for this block.
    _, h, wp = x_ref.shape
    x = x_ref[...].astype(jnp.float32)

    if n_rows % block_t != 0:
        # Tail block: zero the padded (out-of-range) packed rows ONCE on the input.
        # The stencils never mix data across axis 0, so zero rows contribute zero.
        base = pl.program_id(0) * block_t
        row = jax.lax.broadcasted_iota(jnp.int32, x.shape, 0) + base
        x = jnp.where(row < n_rows, x, 0.0)

    # Neighbour tiles via full-shape XLU rotations (no shrinking slices).
    # shift = size-1 fetches the neighbour one step in one direction, shift = 1 the
    # other; which is which depends on the rotate convention, but every use below
    # is either symmetric in the two directions or masked convention-independently.
    x_h1 = pltpu.roll(x, h - 1, axis=1)       # x[i +/- 1, j]
    x_h2 = pltpu.roll(x, 1, axis=1)           # x[i -/+ 1, j]
    x_w1 = pltpu.roll(x, wp - 1, axis=2)      # x[i, j +/- 1]
    x_w2 = pltpu.roll(x, 1, axis=2)           # x[i, j -/+ 1]
    x_hw = pltpu.roll(x_h1, wp - 1, axis=2)   # x[i +/- 1, j +/- 1]

    tyy = (x_h1 + x_h2) - 2.0 * x             # centred 2nd diff along H (full tile)
    txx = (x_w1 + x_w2) - 2.0 * x             # centred 2nd diff along W (full tile)
    txy = (x_hw + x) - (x_h1 + x_w1)          # 2x2 cross difference   (full tile)

    # Validity masks (2D, broadcast over the T axis).
    hi = jax.lax.broadcasted_iota(jnp.int32, (h, wp), 0)   # row index within slice
    wi = jax.lax.broadcasted_iota(jnp.int32, (h, wp), 1)   # packed column index
    if wp != w:
        # Packing only happens when w is a power of two (wrapper gate), so the
        # within-slice column index is just the low bits.
        wi = wi & (w - 1)

    m_yy = (hi >= 1) & (hi <= h - 2)          # both H-neighbours in range
    m_xx = (wi >= 1) & (wi <= w - 2)          # both W-neighbours in the same slice
    # Cross term: valid iff the rolled index differs by exactly 1, i.e. the roll did
    # not wrap at the H edge and did not cross a packed-slice seam.  Correct for
    # either rotation direction (requires H >= 3 and W >= 3, enforced in wrapper).
    hi_r = pltpu.roll(hi, h - 1, axis=0)
    wi_r = pltpu.roll(wi, wp - 1, axis=1)
    m_xy = (jnp.abs(hi_r - hi) == 1) & (jnp.abs(wi_r - wi) == 1)

    tyy = jnp.where(m_yy[None], tyy, 0.0)
    txx = jnp.where(m_xx[None], txx, 0.0)
    txy = jnp.where(m_xy[None], txy, 0.0)

    s_yy = jnp.sum(tyy * tyy)
    s_xx = jnp.sum(txx * txx)
    s_xy = jnp.sum(txy * txy)

    lane = jax.lax.broadcasted_iota(jnp.int32, o_ref.shape, 2)
    o_ref[...] = jnp.where(lane == 0, s_yy, jnp.where(lane == 1, s_xx, s_xy))


def _chip_sizes():
    """(target_block_bytes, vmem_limit_bytes) chosen per TPU generation."""
    try:
        vmem_cap = int(pltpu.get_tpu_info().vmem_capacity_bytes)
    except Exception:
        vmem_cap = 64 * 1024 * 1024            # conservative (v7x-sized VMEM)
    if vmem_cap >= 96 * 1024 * 1024:           # v5e / v6e: 128 MiB physical VMEM
        return 4 << 20, 64 << 20
    return 2 << 20, 40 << 20                   # v7x: 64 MiB physical VMEM


def bend_penalty(pred, *, target_block_bytes=None):
    """Equivalent of Bend_Penalty().forward(pred) for NCHW `pred`."""
    B, C, H, W = pred.shape
    if H < 3 or W < 3:
        raise ValueError("Bend_Penalty needs H >= 3 and W >= 3.")
    N = B * C
    itemsize = jnp.dtype(pred.dtype).itemsize

    auto_block_bytes, vmem_limit = _chip_sizes()
    if target_block_bytes is None:
        target_block_bytes = auto_block_bytes

    # Lane packing: put k = 128 // W slices side by side so the last (lane) dim is a
    # dense multiple of 128.  Only done when W divides 128 (then W is a power of 2).
    # TODO(synk): W that neither divides 128 nor is a multiple of it stays unpacked
    # (correct but lane-sparse for the rolls).
    x = pred.reshape(N, H, W)                  # keep original dtype; cast after DMA
    k = 128 // W if (W < 128 and 128 % W == 0) else 1
    if k > 1:
        n_pad = (-N) % k
        if n_pad:
            x = jnp.concatenate([x, jnp.zeros((n_pad, H, W), x.dtype)], axis=0)
        n_rows = (N + n_pad) // k
        x = x.reshape(n_rows, k, H, W).transpose(0, 2, 1, 3).reshape(n_rows, H, k * W)
    else:
        n_rows = N
    Wp = k * W

    # Block size: as many packed rows per step as the per-chip target block size
    # (and a conservative VMEM working-set bound) allows.
    row_in_bytes = H * Wp * itemsize
    row_f32_bytes = H * Wp * 4
    per_row_vmem = 2 * row_in_bytes + 8 * row_f32_bytes   # 2x DMA buffers + f32 temps
    if per_row_vmem > vmem_limit:
        # TODO(synk): halo-aware spatial tiling for very large single (H, W) slices.
        raise ValueError("A single (H, W) slice does not fit the VMEM budget; "
                         "spatial (halo) tiling is not implemented.")
    t_cap = max(1, (vmem_limit * 3 // 4) // per_row_vmem)
    T = int(max(1, min(n_rows, target_block_bytes // max(1, row_in_bytes), t_cap)))
    G = (n_rows + T - 1) // T

    cost = pl.CostEstimate(
        flops=int(18 * n_rows * H * Wp),
        transcendentals=0,
        bytes_accessed=int(n_rows * H * Wp * itemsize + G * 8 * 128 * 4),
    )

    partials = pl.pallas_call(
        functools.partial(_bend_penalty_kernel, w=W, n_rows=n_rows, block_t=T),
        out_shape=jax.ShapeDtypeStruct((G, 8, 128), jnp.float32),
        grid_spec=pltpu.PrefetchScalarGridSpec(
            num_scalar_prefetch=0,
            grid=(G,),
            in_specs=[pl.BlockSpec((T, H, Wp), lambda i: (i, 0, 0))],
            out_specs=pl.BlockSpec((1, 8, 128), lambda i: (i, 0, 0)),
        ),
        compiler_params=pltpu.CompilerParams(
            dimension_semantics=("parallel",),
            vmem_limit_bytes=int(vmem_limit),
        ),
        cost_estimate=cost,
    )(x)

    s_yy = jnp.sum(partials[:, 0, 0])
    s_xx = jnp.sum(partials[:, 0, 1])
    s_xy = jnp.sum(partials[:, 0, 2])

    # .mean() denominators match the PyTorch tensor sizes exactly (zero-padded
    # slices / masked positions contribute nothing to the sums).
    n_yy = float(N * (H - 2) * W)
    n_xx = float(N * H * (W - 2))
    n_xy = float(N * (H - 1) * (W - 1))
    return s_yy / n_yy + s_xx / n_xx + 2.0 * s_xy / n_xy


def _bend_penalty_ref(pred):
    # Pure-JAX reference of the PyTorch forward (for correctness check).
    pred = pred.astype(jnp.float32)
    tyy = jnp.diff(pred, n=2, axis=2)
    txx = jnp.diff(pred, n=2, axis=3)
    txy = jnp.diff(jnp.diff(pred, axis=3), axis=2)
    return jnp.mean(tyy ** 2) + jnp.mean(txx ** 2) + 2.0 * jnp.mean(txy ** 2)


if __name__ == "__main__":
    key = jax.random.PRNGKey(0)
    # 2D displacement field: 2 channels (dy, dx), small spatial size.
    B, C, H, W = 2, 2, 16, 16
    pred = jax.random.normal(key, (B, C, H, W), dtype=jnp.float32)

    out = bend_penalty(pred)
    out = jax.block_until_ready(out)

    ref = _bend_penalty_ref(pred)
    assert jnp.allclose(out, ref, rtol=1e-5, atol=1e-5), (out, ref)
    print("KERNEL_OK")
</pallas_src>

<mosaic_0001>
module attributes {stable_mosaic.version = 11 : i64} {
  func.func @_bend_penalty_kernel(%arg0: i32, %arg1: memref<1x16x128xf32, #tpu.memory_space<vmem>>, %arg2: memref<1x8x128xf32, #tpu.memory_space<vmem>>) attributes {dimension_semantics = [#tpu.dimension_semantics<parallel>], iteration_bounds = array<i64: 1>, scalar_prefetch = 0 : i64, scratch_operands = 0 : i64, tpu.core_type = #tpu.core_type<tc>, window_params = [{transform_indices = @transform_0, window_bounds = array<i64: 1, 16, 128>}, {transform_indices = @transform_1, window_bounds = array<i64: 1, 8, 128>}]} {
    %c0 = arith.constant 0 : index
    %c0_0 = arith.constant 0 : index
    %c0_1 = arith.constant 0 : index
    %0 = vector.load %arg1[%c0, %c0_0, %c0_1] : memref<1x16x128xf32, #tpu.memory_space<vmem>>, vector<1x16x128xf32>
    %c15_i32 = arith.constant 15 : i32
    %1 = tpu.dynamic_rotate %0 by %c15_i32 dim 1 : vector<1x16x128xf32>, i32 -> vector<1x16x128xf32>
    %c1_i32 = arith.constant 1 : i32
    %2 = tpu.dynamic_rotate %0 by %c1_i32 dim 1 : vector<1x16x128xf32>, i32 -> vector<1x16x128xf32>
    %c127_i32 = arith.constant 127 : i32
    %3 = tpu.dynamic_rotate %0 by %c127_i32 dim 2 : vector<1x16x128xf32>, i32 -> vector<1x16x128xf32>
    %c1_i32_2 = arith.constant 1 : i32
    %4 = tpu.dynamic_rotate %0 by %c1_i32_2 dim 2 : vector<1x16x128xf32>, i32 -> vector<1x16x128xf32>
    %c127_i32_3 = arith.constant 127 : i32
    %5 = tpu.dynamic_rotate %1 by %c127_i32_3 dim 2 : vector<1x16x128xf32>, i32 -> vector<1x16x128xf32>
    %6 = arith.addf %1, %2 : vector<1x16x128xf32>
    %cst = arith.constant 2.000000e+00 : f32
    %7 = vector.broadcast %cst : f32 to vector<1x16x128xf32>
    %8 = arith.mulf %7, %0 : vector<1x16x128xf32>
    %9 = arith.subf %6, %8 : vector<1x16x128xf32>
    %10 = arith.addf %3, %4 : vector<1x16x128xf32>
    %cst_4 = arith.constant 2.000000e+00 : f32
    %11 = vector.broadcast %cst_4 : f32 to vector<1x16x128xf32>
    %12 = arith.mulf %11, %0 : vector<1x16x128xf32>
    %13 = arith.subf %10, %12 : vector<1x16x128xf32>
    %14 = arith.addf %5, %0 : vector<1x16x128xf32>
    %15 = arith.addf %1, %3 : vector<1x16x128xf32>
    %16 = arith.subf %14, %15 : vector<1x16x128xf32>
    %17 = tpu.iota {dimensions = array<i32: 0>} : vector<16x128xi32>
    %18 = tpu.iota {dimensions = array<i32: 1>} : vector<16x128xi32>
    %c15_i32_5 = arith.constant 15 : i32
    %19 = vector.broadcast %c15_i32_5 : i32 to vector<16x128xi32>
    %20 = arith.andi %18, %19 : vector<16x128xi32>
    %c1_i32_6 = arith.constant 1 : i32
    %21 = vector.broadcast %c1_i32_6 : i32 to vector<16x128xi32>
    %22 = arith.cmpi sge, %17, %21 : vector<16x128xi32>
    %c14_i32 = arith.constant 14 : i32
    %23 = vector.broadcast %c14_i32 : i32 to vector<16x128xi32>
    %24 = arith.cmpi sle, %17, %23 : vector<16x128xi32>
    %25 = arith.andi %22, %24 : vector<16x128xi1>
    %c1_i32_7 = arith.constant 1 : i32
    %26 = vector.broadcast %c1_i32_7 : i32 to vector<16x128xi32>
    %27 = arith.cmpi sge, %20, %26 : vector<16x128xi32>
    %c14_i32_8 = arith.constant 14 : i32
    %28 = vector.broadcast %c14_i32_8 : i32 to vector<16x128xi32>
    %29 = arith.cmpi sle, %20, %28 : vector<16x128xi32>
    %30 = arith.andi %27, %29 : vector<16x128xi1>
    %c15_i32_9 = arith.constant 15 : i32
    %31 = tpu.dynamic_rotate %17 by %c15_i32_9 dim 0 : vector<16x128xi32>, i32 -> vector<16x128xi32>
    %c127_i32_10 = arith.constant 127 : i32
    %32 = tpu.dynamic_rotate %20 by %c127_i32_10 dim 1 : vector<16x128xi32>, i32 -> vector<16x128xi32>
    %33 = arith.subi %31, %17 : vector<16x128xi32>
    %34 = math.absi %33 : vector<16x128xi32>
    %c1_i32_11 = arith.constant 1 : i32
    %35 = vector.broadcast %c1_i32_11 : i32 to vector<16x128xi32>
    %36 = arith.cmpi eq, %34, %35 : vector<16x128xi32>
    %37 = arith.subi %32, %20 : vector<16x128xi32>
    %38 = math.absi %37 : vector<16x128xi32>
    %c1_i32_12 = arith.constant 1 : i32
    %39 = vector.broadcast %c1_i32_12 : i32 to vector<16x128xi32>
    %40 = arith.cmpi eq, %38, %39 : vector<16x128xi32>
    %41 = arith.andi %36, %40 : vector<16x128xi1>
    %42 = vector.shape_cast %25 : vector<16x128xi1> to vector<1x16x128xi1>
    %cst_13 = arith.constant 0.000000e+00 : f32
    %43 = vector.broadcast %cst_13 : f32 to vector<1x16x128xf32>
    %44 = arith.select %42, %9, %43 : vector<1x16x128xi1>, vector<1x16x128xf32>
    %45 = vector.shape_cast %30 : vector<16x128xi1> to vector<1x16x128xi1>
    %cst_14 = arith.constant 0.000000e+00 : f32
    %46 = vector.broadcast %cst_14 : f32 to vector<1x16x128xf32>
    %47 = arith.select %45, %13, %46 : vector<1x16x128xi1>, vector<1x16x128xf32>
    %48 = vector.shape_cast %41 : vector<16x128xi1> to vector<1x16x128xi1>
    %cst_15 = arith.constant 0.000000e+00 : f32
    %49 = vector.broadcast %cst_15 : f32 to vector<1x16x128xf32>
    %50 = arith.select %48, %16, %49 : vector<1x16x128xi1>, vector<1x16x128xf32>
    %51 = arith.mulf %44, %44 : vector<1x16x128xf32>
    %52 = vector.shape_cast %51 : vector<1x16x128xf32> to vector<1x1x16x128xf32>
    %cst_16 = arith.constant dense<0.000000e+00> : vector<1xf32>
    %53 = vector.multi_reduction <add>, %52, %cst_16 [1, 2, 3] : vector<1x1x16x128xf32> to vector<1xf32>
    %54 = vector.shape_cast %53 : vector<1xf32> to vector<1x1x1x1xf32>
    %55 = vector.extract %54[0, 0, 0, 0] : f32 from vector<1x1x1x1xf32>
    %56 = arith.mulf %47, %47 : vector<1x16x128xf32>
    %57 = vector.shape_cast %56 : vector<1x16x128xf32> to vector<1x1x16x128xf32>
    %cst_17 = arith.constant dense<0.000000e+00> : vector<1xf32>
    %58 = vector.multi_reduction <add>, %57, %cst_17 [1, 2, 3] : vector<1x1x16x128xf32> to vector<1xf32>
    %59 = vector.shape_cast %58 : vector<1xf32> to vector<1x1x1x1xf32>
    %60 = vector.extract %59[0, 0, 0, 0] : f32 from vector<1x1x1x1xf32>
    %61 = arith.mulf %50, %50 : vector<1x16x128xf32>
    %62 = vector.shape_cast %61 : vector<1x16x128xf32> to vector<1x1x16x128xf32>
    %cst_18 = arith.constant dense<0.000000e+00> : vector<1xf32>
    %63 = vector.multi_reduction <add>, %62, %cst_18 [1, 2, 3] : vector<1x1x16x128xf32> to vector<1xf32>
    %64 = vector.shape_cast %63 : vector<1xf32> to vector<1x1x1x1xf32>
    %65 = vector.extract %64[0, 0, 0, 0] : f32 from vector<1x1x1x1xf32>
    %66 = tpu.iota {dimensions = array<i32: 2>} : vector<1x8x128xi32>
    %c0_i32 = arith.constant 0 : i32
    %67 = vector.broadcast %c0_i32 : i32 to vector<1x8x128xi32>
    %68 = arith.cmpi eq, %66, %67 : vector<1x8x128xi32>
    %c1_i32_19 = arith.constant 1 : i32
    %69 = vector.broadcast %c1_i32_19 : i32 to vector<1x8x128xi32>
    %70 = arith.cmpi eq, %66, %69 : vector<1x8x128xi32>
    %71 = vector.broadcast %60 : f32 to vector<1x8x128xf32>
    %72 = vector.broadcast %65 : f32 to vector<1x8x128xf32>
    %73 = arith.select %70, %71, %72 : vector<1x8x128xi1>, vector<1x8x128xf32>
    %74 = vector.broadcast %55 : f32 to vector<1x8x128xf32>
    %75 = arith.select %68, %74, %73 : vector<1x8x128xi1>, vector<1x8x128xf32>
    %c0_20 = arith.constant 0 : index
    %c0_21 = arith.constant 0 : index
    %c0_22 = arith.constant 0 : index
    %76 = vector.load %arg2[%c0_20, %c0_21, %c0_22] : memref<1x8x128xf32, #tpu.memory_space<vmem>>, vector<1x8x128xf32>
    tpu.vector_store %arg2[%c0_20, %c0_21, %c0_22], %75 {strides = array<i32>} : memref<1x8x128xf32, #tpu.memory_space<vmem>>, vector<1x8x128xf32>,
    return
  }
  func.func @transform_0(%arg0: i32) -> (i32, i32, i32) {
    %c0_i32 = arith.constant 0 : i32
    %c0_i32_0 = arith.constant 0 : i32
    %c0_i32_1 = arith.constant 0 : i32
    return %arg0, %c0_i32, %c0_i32_0 : i32, i32, i32
  }
  func.func @transform_1(%arg0: i32) -> (i32, i32, i32) {
    %c0_i32 = arith.constant 0 : i32
    %c0_i32_0 = arith.constant 0 : i32
    %c0_i32_1 = arith.constant 0 : i32
    return %arg0, %c0_i32, %c0_i32_0 : i32, i32, i32
  }
}

</mosaic_0001>

<bundles_post_ra>
// kernel: tpu_custom_call.1
= control target key start
LH: loop header
LB: loop body
LE: loop exit
PB: predicated region body
PF: predicated region fallthrough
CT: control target
= control target key end

     0   :  { %6 = vsyncpa [#allocation3], 0  ;;  %s284_s0 = inlined_call_operand.hbm [shape: f32[1,16,128], index: 0, kind: input, shape index: {}]   ;;  %s285_s1 = inlined_call_operand.hbm [shape: f32[1,8,128], index: 1, kind: output, shape index: {}]  }
   0x1   :  { %7 = vsyncpa [#allocation4], 0  ;;  %s229_s6 = smov [#allocation2]   ;;  %s181_s10 = scalar_lea.hbm %s284_s0, 256 }
   0x2   :  { %s13_s7 = sshll.u32 %s229_s6, 4  ;;  %p182_p0 = scmp.ne.s32.totalorder %s284_s0, %s181_s10  ;;  %s14_s7 = int_to_ptr.vmem [resolvable:$true] %s13_s7 }
   0x3   :  { %p185_p1 = scmp.lt.u32.totalorder %s181_s10, %s284_s0 }
   0x5   :  { %p187_p2 = pnand %p185_p1, %p182_p0 }
   0x7   :  { %190 = shalt.err (!%p187_p2)
}
   0x8   :  { %s191_s15 = scalar_lea.vmem %s14_s7, 256  ;;  %p196_p4 = scmp.lt.s32.totalorder %s14_s7, %s14_s7 }
   0x9   :  { %p192_p3 = scmp.ne.s32.totalorder %s14_s7, %s191_s15  ;;  %p197_p5 = scmp.lt.s32.totalorder %s191_s15, %s191_s15 }
   0xb   :  { %p198_p6 = por %p197_p5, %p196_p4 }
   0xd   :  { %p199_p7 = pnand %p198_p6, %p192_p3 }
   0xf   :  { %202 = shalt.err (!%p199_p7)
}
  0x10   :  { %s230_s16 = smov 128   ;;  %s231_s17 = smov 8  }
  0x11   :  { %19 = dma.hbm_to_vmem [thread:$0]  %s284_s0, 256, %s14_s7, [#allocation3], %s230_s16, %s230_s16, %s231_s17  }
  0x12   :  { %225 = dma.done.wait [#allocation3], 256  }
  0x13   :  { %226 = vsyncadd [#allocation3], 4294967040  ;;  %v27_v0 = vlaneseq  ;;  %s232_s20 = smov 127   ;;  %v260_v7 = vld [vmem:[#allocation2 + $0x8] sm:$0xff]  ;;  %v23_v8 = vld [vmem:[#allocation2] sm:$0xff]  ;;  %s233_s0 = smov 1  }
  0x14   :  { %39 = vrot.lane.b32.xlu1 %v260_v7, %s232_s20  ;;  %v25_v9 = vrot.slane %v23_v8, 1  ;;  %v26_v10 = vrot.slane %v260_v7, 1  ;;  %v32_v17 = vrot.slane %v23_v8, 7  ;;  %v33_v18 = vrot.slane %v260_v7, 7  ;;  %s234_s23 = smov [#allocation5]  }
  0x15   :  { %v257_v1 = vand.u32 127, %v27_v0  ;;  %v28_v2 = vshrl.u32 %v27_v0, 7  ;;  %v51_v23 = vmul.f32 2.0, %v23_v8  ;;  %v52_v24 = vmul.f32 2.0, %v260_v7  ;;  %s157_s24 = sshll.u32 %s234_s23, 4  ;;  %s158_s24 = int_to_ptr.vmem [resolvable:$true] %s157_s24 }
  0x16   :  { %s203_s26 = scalar_lea.vmem %s158_s24, 128  ;;  %p208_p9 = scmp.lt.s32.totalorder %s158_s24, %s158_s24 }
  0x17   :  { %v68_v3 = vand.u32 15, %v257_v1  ;;  %v65_v4 = vadd.s32 8, %v28_v2  ;;  %v78_v5 = vrot.slane %v28_v2, 1  ;;  %vm29_vm0 = vcmp.lt.s32.totalorder %v28_v2, 7  ;;  %p204_p8 = scmp.ne.s32.totalorder %s158_s24, %s203_s26  ;;  %p209_p10 = scmp.lt.s32.totalorder %s203_s26, %s203_s26 }
  0x18   :  { %41 = vrot.lane.b32.xlu1 %v23_v8, %s233_s0  ;;  %v30_v15 = vsel %vm29_vm0, %v25_v9, %v26_v10  ;;  %v31_v16 = vsel %vm29_vm0, %v26_v10, %v25_v9  ;;  %vm34_vm1 = vcmp.lt.s32.totalorder %v28_v2, 1  ;;  %vm69_vm2 = vcmp.ge.s32.totalorder %v28_v2, 1 }
  0x19   :  { %82 = vrot.lane.b32.xlu0 %v68_v3, %s232_s20  ;;  %v79_v6 = vrot.slane %v65_v4, 1  ;;  %v36_v19 = vsel %vm34_vm1, %v33_v18, %v32_v17  ;;  %v35_v20 = vsel %vm34_vm1, %v32_v17, %v33_v18  ;;  %vm72_vm3 = vcmp.le.s32.totalorder %v65_v4, 14  ;;  %p210_p11 = por %p209_p10, %p208_p9 }
  0x1a   :  { %v49_v21 = vadd.f32 %v36_v19, %v30_v15  ;;  %v50_v22 = vadd.f32 %v35_v20, %v31_v16  ;;  %vm75_vm4 = vcmp.ge.s32.totalorder %v68_v3, 1  ;;  %vm76_vm5 = vcmp.le.s32.totalorder %v68_v3, 14 }
  0x1b   :  { %v80_v11 = vsel %vm29_vm0, %v78_v5, %v79_v6  ;;  %v81_v12 = vsel %vm29_vm0, %v79_v6, %v78_v5  ;;  %vm77_vm6 = vmand %vm75_vm4, %vm76_vm5  ;;  %vm144_vm12 = vcmp.eq.s32.totalorder %v257_v1, 1  ;;  %vm143_vm13 = vcmp.eq.s32.totalorder %v257_v1, 0  ;;  %p211_p12 = pnand %p210_p11, %p204_p8 }
  0x1c   :  { %v84_v13 = vsub.s32 %v80_v11, %v28_v2  ;;  %v85_v14 = vsub.s32 %v81_v12, %v65_v4  ;;  %45 = vrot.lane.b32.xlu1 %v30_v15, %s232_s20  ;;  %v53_v25 = vsub.f32 %v49_v21, %v51_v23  ;;  %v54_v26 = vsub.f32 %v50_v22, %v52_v24 }
  0x1d   :  { %37 = vrot.lane.b32.xlu0 %v23_v8, %s232_s20 }
  0x1e   :  { %v101_v27 = vsel %vm69_vm2, %v53_v25, 0.0  ;;  %v102_v28 = vsel %vm72_vm3, %v54_v26, 0.0  ;;  %v87_v34 = vsub.s32 0, %v84_v13  ;;  %v90_v37 = vsub.s32 0, %v85_v14 }
  0x1f   :  { %v107_v29 = vmul.f32 %v101_v27, %v101_v27  ;;  %v108_v30 = vmul.f32 %v102_v28, %v102_v28 }
  0x20   :  { %v166_v39 = vmin.u32 %v87_v34, %v84_v13  ;;  %v167_v43 = vmin.u32 %v90_v37, %v85_v14 }
  0x21   :  { %43 = vrot.lane.b32.xlu0 %v260_v7, %s233_s0  ;;  %v109_v31 = vadd.f32 %v108_v30, %v107_v29 }
  0x22   :  { %vm92_vm7 = vcmp.eq.s32.totalorder %v166_v39, 1  ;;  %vm93_vm9 = vcmp.eq.s32.totalorder %v167_v43, 1 }
  0x25   :  { %47 = vrot.lane.b32.xlu0 %v31_v16, %s232_s20 }
  0x40   :  { %110 = vadd.xlane.f32.xlu1 %v109_v31 }
  0x86   :  { %v40_v35 = vpop.permute.xlu1 %39 }
  0x87   :  { %v62_v53 = vadd.f32 %v40_v35, %v31_v16 }
  0x8a   :  { %v42_v40 = vpop.permute.xlu1 %41 }
  0x8b   :  { %v83_v32 = vpop.permute.xlu0 %82 }
  0x8c   :  { %v94_v33 = vsub.s32 %v83_v32, %v68_v3 }
  0x8e   :  { %v96_v36 = vsub.s32 0, %v94_v33  ;;  %v46_v48 = vpop.permute.xlu1 %45 }
  0x8f   :  { %v38_v38 = vpop.permute.xlu0 %37  ;;  %v59_v50 = vadd.f32 %v46_v48, %v23_v8 }
  0x90   :  { %v168_v41 = vmin.u32 %v96_v36, %v94_v33  ;;  %v55_v42 = vadd.f32 %v42_v40, %v38_v38  ;;  %v61_v47 = vadd.f32 %v38_v38, %v30_v15 }
  0x92   :  { %v57_v45 = vsub.f32 %v55_v42, %v51_v23  ;;  %vm98_vm8 = vcmp.eq.s32.totalorder %v168_v41, 1  ;;  %v63_v54 = vsub.f32 %v59_v50, %v61_v47 }
  0x93   :  { %v44_v44 = vpop.permute.xlu0 %43  ;;  %vm99_vm10 = vmand %vm92_vm7, %vm98_vm8 }
  0x94   :  { %v56_v46 = vadd.f32 %v44_v44, %v40_v35  ;;  %v103_v51 = vsel %vm77_vm6, %v57_v45, 0.0  ;;  %v105_v60 = vsel %vm99_vm10, %v63_v54, 0.0  ;;  %vm100_vm11 = vmand %vm93_vm9, %vm98_vm8 }
  0x95   :  { %v119_v57 = vmul.f32 %v103_v51, %v103_v51  ;;  %v131_v63 = vmul.f32 %v105_v60, %v105_v60 }
  0x96   :  { %v58_v49 = vsub.f32 %v56_v46, %v52_v24 }
  0x97   :  { %v48_v52 = vpop.permute.xlu0 %47 }
  0x98   :  { %v60_v55 = vadd.f32 %v48_v52, %v260_v7  ;;  %v104_v56 = vsel %vm77_vm6, %v58_v49, 0.0 }
  0x99   :  { %v120_v58 = vmul.f32 %v104_v56, %v104_v56 }
  0x9a   :  { %v64_v59 = vsub.f32 %v60_v55, %v62_v53 }
  0x9b   :  { %v121_v61 = vadd.f32 %v120_v58, %v119_v57 }
  0x9c   :  { %v106_v62 = vsel %vm100_vm11, %v64_v59, 0.0 }
  0x9d   :  { %122 = vadd.xlane.f32.xlu0 %v121_v61  ;;  %v132_v0 = vmul.f32 %v106_v62, %v106_v62 }
  0x9f   :  { %v133_v2 = vadd.f32 %v132_v0, %v131_v63 }
  0xa1   :  { %134 = vadd.xlane.f32.xlu0 %v133_v2 }
  0xcd   :  { %v111_v3 = vpop.xlane.xlu1 %110 }
  0xce   :  { %v112_v4 = vrot.slane %v111_v3, 4 }
  0xd0   :  { %v113_v5 = vadd.f32 %v112_v4, %v111_v3 }
  0xd2   :  { %v114_v6 = vrot.slane %v113_v5, 2 }
  0xd4   :  { %v115_v7 = vadd.f32 %v114_v6, %v113_v5 }
  0xd6   :  { %v116_v8 = vrot.slane %v115_v7, 1 }
  0xd8   :  { %v117_v9 = vadd.f32 %v116_v8, %v115_v7 }
  0xda   :  { %169 = vpush %v117_v9 }
 0x10b   :  { %s170_s21 = spop %169 }
 0x10c   :  { %v148_v26 = vstv %s170_s21 }
 0x12a   :  { %v123_v10 = vpop.xlane.xlu0 %122 }
 0x12b   :  { %v124_v11 = vrot.slane %v123_v10, 4 }
 0x12d   :  { %v125_v12 = vadd.f32 %v124_v11, %v123_v10 }
 0x12e   :  { %v135_v13 = vpop.xlane.xlu0 %134 }
 0x12f   :  { %v126_v14 = vrot.slane %v125_v12, 2  ;;  %v136_v15 = vrot.slane %v135_v13, 4 }
 0x131   :  { %v137_v16 = vadd.f32 %v136_v15, %v135_v13  ;;  %v127_v17 = vadd.f32 %v126_v14, %v125_v12 }
 0x133   :  { %v138_v18 = vrot.slane %v137_v16, 2  ;;  %v128_v19 = vrot.slane %v127_v17, 1 }
 0x135   :  { %v139_v20 = vadd.f32 %v138_v18, %v137_v16  ;;  %v129_v21 = vadd.f32 %v128_v19, %v127_v17 }
 0x137   :  { %171 = vpush %v129_v21  ;;  %v140_v22 = vrot.slane %v139_v20, 1 }
 0x139   :  { %v141_v23 = vadd.f32 %v140_v22, %v139_v20 }
 0x13b   :  { %173 = vpush %v141_v23 }
 0x168   :  { %s172_s22 = spop %171 }
 0x169   :  { %v145_v24 = vstv %s172_s22 }
 0x16c   :  { %s174_s25 = spop %173 }
 0x16d   :  { %v146_v25 = vstv %s174_s25 }
 0x16e   :  { %v147_v27 = vsel %vm144_vm12, %v145_v24, %v146_v25 }
 0x16f   :  { %v149_v28 = vsel %vm143_vm13, %v148_v26, %v147_v27 }
 0x170   :  { %150 = vst [vmem:[#allocation5] sm:$0xff] %v149_v28 }
 0x171   :  { %214 = shalt.err (!%p211_p12)
}
 0x172   :  { %s215_s29 = scalar_lea.hbm %s285_s1, 128 }
 0x173   :  { %p216_p13 = scmp.ne.s32.totalorder %s285_s1, %s215_s29  ;;  %p219_p0 = scmp.lt.u32.totalorder %s215_s29, %s285_s1 }
 0x175   :  { %p221_p1 = pnand %p219_p0, %p216_p13 }
 0x177   :  { %224 = shalt.err (!%p221_p1)
}
 0x178   :  { %160 = dma.vmem_to_hbm [thread:$0]  %s158_s24, 128, %s285_s1, [#allocation4]  }
 0x179   :  { %227 = dma.done.wait [#allocation4], 128  }
 0x17a   :  { %228 = vsyncadd [#allocation4], 4294967168 }
 0x17b   :  { %164 = vsyncpa [#allocation3], 1 }
 0x17c   :  { %165 = vsyncpa [#allocation4], 1 }

</bundles_post_ra>
